<compile_context>
chip_gen: v7x
topology: tpu7x:2x2x1
jax: 0.10.0
libtpu: 0.0.40
codegen_flags: <defaults>
</compile_context>

<pallas_src>
import functools

import jax
import jax.numpy as jnp
from jax.experimental import pallas as pl
from jax.experimental.pallas import tpu as pltpu  # noqa: F401  (TPU backend)

# ---- module hyperparameters (from helper.py) --------------------------------
HIDDEN_SIZE = 2
INPUT_SIZE = 5
NUM_CLASSES = 1
NUM_LAYERS = 1          # unused by forward (single SLSTM cell)
SEQ_LENGTH = 4          # unused by forward
NUM_STEPS = 25
FC1_FEATURES = 128
THRESHOLD = 1.0         # snn.SLSTM default threshold (spike output is discarded)

LANE = 128
SUB = 8


def _round_up(x, m):
    return (x + m - 1) // m * m


# ---- Pallas kernel -----------------------------------------------------------
def slstm_fused_kernel(x_ref, wih_ref, bias_ref, w1_ref, b1_ref, w2_ref, b2_ref,
                       out_ref, *, Hp):
    """Single fused step: LSTMCell (with h_0=c_0=0) + relu/fc_1/relu/fc.

    Gate slabs in wih/bias are (i, g, o), each Hp=128 lanes wide; the forget
    gate and the h_0 @ W_hh^T term are dropped because the zero state makes
    them no-ops (f * c_0 == 0, h_0 contribution == 0).
    """
    x = x_ref[...]                                               # (Bp, Ip)

    gates = (jnp.dot(x, wih_ref[...], preferred_element_type=jnp.float32)
             + bias_ref[...])                                    # (Bp, 3*Hp)

    i_g = jax.nn.sigmoid(gates[:, 0 * Hp:1 * Hp])                # input gate
    g_g = jnp.tanh(gates[:, 1 * Hp:2 * Hp])                      # cell candidate
    o_g = jax.nn.sigmoid(gates[:, 2 * Hp:3 * Hp])                # output gate

    c1 = i_g * g_g                                               # syn (c_0 == 0)
    mem = o_g * jnp.tanh(c1)                                     # mem (new hidden)

    # spk = (mem - THRESHOLD > 0) is produced by snn.SLSTM but never used in the
    # output path of the reference forward, so it is not materialized here.

    z = jnp.maximum(mem, 0.0)                                    # relu(mem)
    z = jnp.dot(z, w1_ref[...], preferred_element_type=jnp.float32) + b1_ref[...]
    z = jnp.maximum(z, 0.0)                                      # relu(fc_1(...))
    out = jnp.dot(z, w2_ref[...], preferred_element_type=jnp.float32) + b2_ref[...]

    out_ref[...] = out.astype(out_ref.dtype)                     # (Bp, Cp)


# ---- one-time parameter packing (layout plumbing, done once) -----------------
def prepare_params(params):
    """Pad / transpose / fuse the PyTorch-layout parameters into TPU-friendly
    lane-aligned slabs.  Call once; reuse the result for every forward."""
    w_ih, w_hh, b_ih, b_hh, fc1_w, fc1_b, fc_w, fc_b = params
    del w_hh  # h_0 == 0 -> the recurrent matmul contributes nothing

    H, C, F = HIDDEN_SIZE, NUM_CLASSES, FC1_FEATURES
    Ip = _round_up(INPUT_SIZE, SUB)      # 5 -> 8 (sublane padding only)
    Hp = LANE                            # each gate gets its own 128-lane slab
    Cp = _round_up(C, LANE)

    bias = (b_ih + b_hh).astype(jnp.float32)                     # fused bias

    wih_t = jnp.zeros((Ip, 3 * Hp), jnp.float32)
    bias_p = jnp.zeros((1, 3 * Hp), jnp.float32)
    # PyTorch LSTMCell gate order is (i, f, g, o); keep only (i, g, o).
    for slab, g in enumerate((0, 2, 3)):
        wih_t = wih_t.at[:INPUT_SIZE, slab * Hp:slab * Hp + H].set(
            w_ih[g * H:(g + 1) * H, :].T)
        bias_p = bias_p.at[0, slab * Hp:slab * Hp + H].set(bias[g * H:(g + 1) * H])

    fc1_wt = jnp.zeros((Hp, F), jnp.float32).at[:H, :].set(fc1_w.T)
    fc1_bp = fc1_b.reshape(1, F).astype(jnp.float32)
    fc_wt = jnp.zeros((F, Cp), jnp.float32).at[:, :C].set(fc_w.T)
    fc_bp = jnp.zeros((1, Cp), jnp.float32).at[0, :C].set(fc_b)

    return (wih_t, bias_p, fc1_wt, fc1_bp, fc_wt, fc_bp)


# ---- forward wrapper ----------------------------------------------------------
@functools.partial(jax.jit, static_argnames=("num_steps",))
def slstm_forward(x, packed, num_steps=NUM_STEPS):
    wih_t, bias_p, fc1_wt, fc1_bp, fc_wt, fc_bp = packed
    Hp = LANE
    Cp = fc_wt.shape[1]
    Ip = wih_t.shape[0]

    x = x.reshape(x.shape[0], -1).astype(jnp.float32)            # x.flatten(1)
    B, I = x.shape
    Bp = _round_up(B, SUB)
    x_pad = jnp.zeros((Bp, Ip), jnp.float32).at[:B, :I].set(x)

    # Single-step kernel: no grid, all (tiny) operands resident in VMEM.
    out_padded = pl.pallas_call(
        functools.partial(slstm_fused_kernel, Hp=Hp),
        out_shape=jax.ShapeDtypeStruct((Bp, Cp), jnp.float32),
    )(x_pad, wih_t, bias_p, fc1_wt, fc1_bp, fc_wt, fc_bp)

    out = out_padded[:B, :NUM_CLASSES]                           # (B, num_classes)
    # All num_steps iterations of the reference loop are identical (h_0/c_0 are
    # never updated), so the stacked result is a broadcast of the single step.
    return jnp.broadcast_to(out[None], (num_steps, B, NUM_CLASSES))


# ---- deterministic parameter init (PyTorch-style uniform ranges) -------------
def init_params(key):
    ks = jax.random.split(key, 8)
    k_lstm = 1.0 / (HIDDEN_SIZE ** 0.5)
    k_fc1 = 1.0 / (HIDDEN_SIZE ** 0.5)
    k_fc = 1.0 / (FC1_FEATURES ** 0.5)
    u = lambda k, shape, b: jax.random.uniform(k, shape, jnp.float32, -b, b)
    w_ih = u(ks[0], (4 * HIDDEN_SIZE, INPUT_SIZE), k_lstm)
    w_hh = u(ks[1], (4 * HIDDEN_SIZE, HIDDEN_SIZE), k_lstm)
    b_ih = u(ks[2], (4 * HIDDEN_SIZE,), k_lstm)
    b_hh = u(ks[3], (4 * HIDDEN_SIZE,), k_lstm)
    fc1_w = u(ks[4], (FC1_FEATURES, HIDDEN_SIZE), k_fc1)
    fc1_b = u(ks[5], (FC1_FEATURES,), k_fc1)
    fc_w = u(ks[6], (NUM_CLASSES, FC1_FEATURES), k_fc)
    fc_b = u(ks[7], (NUM_CLASSES,), k_fc)
    return (w_ih, w_hh, b_ih, b_hh, fc1_w, fc1_b, fc_w, fc_b)


# ---- pure-JAX reference (mirrors the PyTorch forward exactly) -----------------
def reference_forward(x, params, num_steps=NUM_STEPS):
    w_ih, w_hh, b_ih, b_hh, fc1_w, fc1_b, fc_w, fc_b = params
    x = x.reshape(x.shape[0], -1)
    B = x.shape[0]
    h0 = jnp.zeros((B, HIDDEN_SIZE), jnp.float32)
    c0 = jnp.zeros((B, HIDDEN_SIZE), jnp.float32)
    outs = []
    for _ in range(num_steps):
        gates = x @ w_ih.T + b_ih + h0 @ w_hh.T + b_hh
        i, f, g, o = jnp.split(gates, 4, axis=1)
        i, f, o = jax.nn.sigmoid(i), jax.nn.sigmoid(f), jax.nn.sigmoid(o)
        g = jnp.tanh(g)
        c1 = f * c0 + i * g
        mem = o * jnp.tanh(c1)
        z = jnp.maximum(mem, 0.0) @ fc1_w.T + fc1_b
        z = jnp.maximum(z, 0.0)
        outs.append(z @ fc_w.T + fc_b)
    return jnp.stack(outs)


if __name__ == "__main__":
    key = jax.random.PRNGKey(0)
    pkey, xkey = jax.random.split(key)
    params = init_params(pkey)
    x = jax.random.normal(xkey, (2, INPUT_SIZE), jnp.float32)  # batch=2, flatten(1) -> 5 features

    packed = prepare_params(params)                            # one-time packing
    out = jax.block_until_ready(slstm_forward(x, packed))
    ref = jax.block_until_ready(reference_forward(x, params))

    assert out.shape == (NUM_STEPS, 2, NUM_CLASSES), out.shape
    if not jnp.allclose(out, ref, atol=1e-5, rtol=1e-5):
        raise AssertionError("Pallas kernel output does not match reference")
    print("KERNEL_OK")
</pallas_src>

<mosaic_0001>
module attributes {stable_mosaic.version = 11 : i64} {
  func.func @slstm_fused_kernel(%arg0: memref<8x8xf32, #tpu.memory_space<vmem>>, %arg1: memref<8x384xf32, #tpu.memory_space<vmem>>, %arg2: memref<1x384xf32, #tpu.memory_space<vmem>>, %arg3: memref<128x128xf32, #tpu.memory_space<vmem>>, %arg4: memref<1x128xf32, #tpu.memory_space<vmem>>, %arg5: memref<128x128xf32, #tpu.memory_space<vmem>>, %arg6: memref<1x128xf32, #tpu.memory_space<vmem>>, %arg7: memref<8x128xf32, #tpu.memory_space<vmem>>) attributes {dimension_semantics = [], scalar_prefetch = 0 : i64, scratch_operands = 0 : i64, tpu.core_type = #tpu.core_type<tc>} {
    %c0 = arith.constant 0 : index
    %c0_0 = arith.constant 0 : index
    %0 = vector.load %arg0[%c0, %c0_0] : memref<8x8xf32, #tpu.memory_space<vmem>>, vector<8x8xf32>
    %c0_1 = arith.constant 0 : index
    %c0_2 = arith.constant 0 : index
    %1 = vector.load %arg1[%c0_1, %c0_2] : memref<8x384xf32, #tpu.memory_space<vmem>>, vector<8x384xf32>
    %cst = arith.constant dense<0.000000e+00> : vector<8x384xf32>
    %2 = tpu.matmul %0, %1, %cst {dimension_numbers = #tpu.dot_dimension_numbers<[1], [0], [0], [1], [0, 0, 1, 1], [], []>} : vector<8x8xf32>, vector<8x384xf32>, vector<8x384xf32> -> vector<8x384xf32>
    %c0_3 = arith.constant 0 : index
    %c0_4 = arith.constant 0 : index
    %3 = vector.load %arg2[%c0_3, %c0_4] : memref<1x384xf32, #tpu.memory_space<vmem>>, vector<1x384xf32>
    %4 = vector.broadcast %3 : vector<1x384xf32> to vector<8x384xf32>
    %5 = arith.addf %2, %4 : vector<8x384xf32>
    %6 = vector.extract_strided_slice %5 {offsets = [0, 0], sizes = [8, 128], strides = [1, 1]} : vector<8x384xf32> to vector<8x128xf32>
    %7 = arith.negf %6 : vector<8x128xf32>
    %8 = math.exp %7 : vector<8x128xf32>
    %cst_5 = arith.constant 1.000000e+00 : f32
    %9 = vector.broadcast %cst_5 : f32 to vector<8x128xf32>
    %10 = arith.addf %9, %8 : vector<8x128xf32>
    %11 = arith.divf %9, %10 : vector<8x128xf32>
    %12 = vector.extract_strided_slice %5 {offsets = [0, 128], sizes = [8, 128], strides = [1, 1]} : vector<8x384xf32> to vector<8x128xf32>
    %13 = math.tanh %12 : vector<8x128xf32>
    %14 = vector.extract_strided_slice %5 {offsets = [0, 256], sizes = [8, 128], strides = [1, 1]} : vector<8x384xf32> to vector<8x128xf32>
    %15 = arith.negf %14 : vector<8x128xf32>
    %16 = math.exp %15 : vector<8x128xf32>
    %cst_6 = arith.constant 1.000000e+00 : f32
    %17 = vector.broadcast %cst_6 : f32 to vector<8x128xf32>
    %18 = arith.addf %17, %16 : vector<8x128xf32>
    %19 = arith.divf %17, %18 : vector<8x128xf32>
    %20 = arith.mulf %11, %13 : vector<8x128xf32>
    %21 = math.tanh %20 : vector<8x128xf32>
    %22 = arith.mulf %19, %21 : vector<8x128xf32>
    %cst_7 = arith.constant 0.000000e+00 : f32
    %23 = vector.broadcast %cst_7 : f32 to vector<8x128xf32>
    %24 = arith.maximumf %22, %23 : vector<8x128xf32>
    %c0_8 = arith.constant 0 : index
    %c0_9 = arith.constant 0 : index
    %25 = vector.load %arg3[%c0_8, %c0_9] : memref<128x128xf32, #tpu.memory_space<vmem>>, vector<128x128xf32>
    %cst_10 = arith.constant dense<0.000000e+00> : vector<8x128xf32>
    %26 = tpu.matmul %24, %25, %cst_10 {dimension_numbers = #tpu.dot_dimension_numbers<[1], [0], [0], [1], [0, 0, 1, 1], [], []>} : vector<8x128xf32>, vector<128x128xf32>, vector<8x128xf32> -> vector<8x128xf32>
    %c0_11 = arith.constant 0 : index
    %c0_12 = arith.constant 0 : index
    %27 = vector.load %arg4[%c0_11, %c0_12] : memref<1x128xf32, #tpu.memory_space<vmem>>, vector<1x128xf32>
    %28 = vector.broadcast %27 : vector<1x128xf32> to vector<8x128xf32>
    %29 = arith.addf %26, %28 : vector<8x128xf32>
    %cst_13 = arith.constant 0.000000e+00 : f32
    %30 = vector.broadcast %cst_13 : f32 to vector<8x128xf32>
    %31 = arith.maximumf %29, %30 : vector<8x128xf32>
    %c0_14 = arith.constant 0 : index
    %c0_15 = arith.constant 0 : index
    %32 = vector.load %arg5[%c0_14, %c0_15] : memref<128x128xf32, #tpu.memory_space<vmem>>, vector<128x128xf32>
    %cst_16 = arith.constant dense<0.000000e+00> : vector<8x128xf32>
    %33 = tpu.matmul %31, %32, %cst_16 {dimension_numbers = #tpu.dot_dimension_numbers<[1], [0], [0], [1], [0, 0, 1, 1], [], []>} : vector<8x128xf32>, vector<128x128xf32>, vector<8x128xf32> -> vector<8x128xf32>
    %c0_17 = arith.constant 0 : index
    %c0_18 = arith.constant 0 : index
    %34 = vector.load %arg6[%c0_17, %c0_18] : memref<1x128xf32, #tpu.memory_space<vmem>>, vector<1x128xf32>
    %35 = vector.broadcast %34 : vector<1x128xf32> to vector<8x128xf32>
    %36 = arith.addf %33, %35 : vector<8x128xf32>
    %c0_19 = arith.constant 0 : index
    %c0_20 = arith.constant 0 : index
    %37 = vector.load %arg7[%c0_19, %c0_20] : memref<8x128xf32, #tpu.memory_space<vmem>>, vector<8x128xf32>
    tpu.vector_store %arg7[%c0_19, %c0_20], %36 {strides = array<i32>} : memref<8x128xf32, #tpu.memory_space<vmem>>, vector<8x128xf32>,
    return
  }
}

</mosaic_0001>

<bundles_post_ra>
// kernel: slstm_forward.1
= control target key start
LH: loop header
LB: loop body
LE: loop exit
PB: predicated region body
PF: predicated region fallthrough
CT: control target
= control target key end

     0   :  { %12 = vsyncpa [#allocation3], 0  ;;  %s818_s0 = inlined_call_operand.vmem [shape: f32[8,8], index: 0, kind: input, shape index: {}]   ;;  %s819_s1 = inlined_call_operand.hbm [shape: f32[8,384], index: 1, kind: input, shape index: {}]   ;;  %s820_s2 = inlined_call_operand.vmem [shape: f32[1,384], index: 2, kind: input, shape index: {}]   ;;  %s821_s3 = inlined_call_operand.hbm [shape: f32[128,128], index: 3, kind: input, shape index: {}]   ;;  %s822_s4 = inlined_call_operand.vmem [shape: f32[1,128], index: 4, kind: input, shape index: {}]   ;;  %s823_s5 = inlined_call_operand.hbm [shape: f32[128,128], index: 5, kind: input, shape index: {}]   ;;  %s824_s6 = inlined_call_operand.vmem [shape: f32[1,128], index: 6, kind: input, shape index: {}]   ;;  %s825_s7 = inlined_call_operand.vmem [shape: f32[8,128], index: 7, kind: output, shape index: {}]  }
   0x1   :  { %13 = vsyncpa [#allocation5], 0  ;;  %s697_s24 = smov [#allocation4]   ;;  %s627_s28 = scalar_lea.hbm %s821_s3, 2048 }
   0x2   :  { %s33_s25 = sshll.u32 %s697_s24, 4  ;;  %p628_p0 = scmp.ne.s32.totalorder %s821_s3, %s627_s28  ;;  %s34_s25 = int_to_ptr.vmem [resolvable:$true] %s33_s25 }
   0x3   :  { %p631_p1 = scmp.lt.u32.totalorder %s627_s28, %s821_s3 }
   0x5   :  { %p633_p2 = pnand %p631_p1, %p628_p0 }
   0x7   :  { %636 = shalt.err (!%p633_p2)
}
   0x8   :  { %s637_s10 = scalar_lea.vmem %s34_s25, 2048  ;;  %p642_p4 = scmp.lt.s32.totalorder %s34_s25, %s34_s25 }
   0x9   :  { %p638_p3 = scmp.ne.s32.totalorder %s34_s25, %s637_s10  ;;  %p643_p5 = scmp.lt.s32.totalorder %s637_s10, %s637_s10 }
   0xb   :  { %p644_p6 = por %p643_p5, %p642_p4 }
   0xd   :  { %p645_p7 = pnand %p644_p6, %p638_p3 }
   0xf   :  { %648 = shalt.err (!%p645_p7)
}
  0x10   :  { %s698_s11 = smov 128   ;;  %s699_s12 = smov 8  }
  0x11   :  { %39 = dma.hbm_to_vmem [thread:$0]  %s821_s3, 2048, %s34_s25, [#allocation5], %s698_s11, %s698_s11, %s699_s12  }
  0x12   :  { %s700_s15 = smov [#allocation2]   ;;  %s701_s17 = smov [#allocation6]  }
  0x13   :  { %s22_s16 = sshll.u32 %s700_s15, 4  ;;  %s47_s18 = sshll.u32 %s701_s17, 4  ;;  %s23_s16 = int_to_ptr.vmem [resolvable:$true] %s22_s16  ;;  %s48_s18 = int_to_ptr.vmem [resolvable:$true] %s47_s18 }
  0x14   :  { %s649_s21 = scalar_lea.hbm %s819_s1, 384 }
  0x15   :  { %p650_p8 = scmp.ne.s32.totalorder %s819_s1, %s649_s21  ;;  %p653_p9 = scmp.lt.u32.totalorder %s649_s21, %s819_s1 }
  0x17   :  { %p655_p10 = pnand %p653_p9, %p650_p8 }
  0x19   :  { %658 = shalt.err (!%p655_p10)
}
  0x1a   :  { %s659_s3 = scalar_lea.vmem %s23_s16, 384  ;;  %p664_p12 = scmp.lt.s32.totalorder %s23_s16, %s23_s16 }
  0x1b   :  { %p660_p11 = scmp.ne.s32.totalorder %s23_s16, %s659_s3  ;;  %p665_p13 = scmp.lt.s32.totalorder %s659_s3, %s659_s3 }
  0x1d   :  { %p666_p0 = por %p665_p13, %p664_p12 }
  0x1f   :  { %p667_p1 = pnand %p666_p0, %p660_p11 }
  0x21   :  { %670 = shalt.err (!%p667_p1)
}
  0x22   :  { %25 = dma.hbm_to_vmem [thread:$0]  %s819_s1, 384, %s23_s16, [#allocation3]  }
  0x23   :  { %s671_s30 = scalar_lea.hbm %s823_s5, 2048 }
  0x24   :  { %p672_p2 = scmp.ne.s32.totalorder %s823_s5, %s671_s30  ;;  %p675_p3 = scmp.lt.u32.totalorder %s671_s30, %s823_s5 }
  0x26   :  { %p677_p4 = pnand %p675_p3, %p672_p2 }
  0x28   :  { %680 = shalt.err (!%p677_p4)
}
  0x29   :  { %s681_s14 = scalar_lea.vmem %s48_s18, 2048  ;;  %p686_p6 = scmp.lt.s32.totalorder %s48_s18, %s48_s18 }
  0x2a   :  { %p682_p5 = scmp.ne.s32.totalorder %s48_s18, %s681_s14  ;;  %p687_p7 = scmp.lt.s32.totalorder %s681_s14, %s681_s14 }
  0x2c   :  { %p688_p8 = por %p687_p7, %p686_p6 }
  0x2e   :  { %p689_p9 = pnand %p688_p8, %p682_p5 }
  0x30   :  { %692 = shalt.err (!%p689_p9)
}
  0x31   :  { %53 = dma.hbm_to_vmem [thread:$0]  %s823_s5, 2048, %s48_s18, [#allocation5], %s698_s11, %s698_s11, %s699_s12  }
  0x32   :  { %693 = dma.done.wait [#allocation3], 384  }
  0x33   :  { %694 = vsyncadd [#allocation3], 4294966912 }
  0x34   :  { %695 = dma.done.wait [#allocation5], 4096  }
  0x35   :  { %696 = vsyncadd [#allocation5], 4294963200  ;;  %v702_v0 = vmov 0.0   ;;  %vm703_vm0 = vmmov 0   ;;  %v67_v1 = vld [vmem:[#allocation2 + $0x8] sm:$0xff]  ;;  %v66_v2 = vld [vmem:[#allocation2] sm:$0xff]  ;;  %v71_v51 = vlaneseq }
  0x36   :  { %154 = vmatprep.mubr.f32.mxu0 %v702_v0  ;;  %484 = vmatprep.subr.mxu1 %v702_v0  ;;  %v65_v3 = vld [vmem:[%s818_s0] sm:$0xff]  ;;  %vm86_vm1 = vcmask 64512   ;;  %v68_v4 = vld [vmem:[#allocation2 + $0x10] sm:$0xff]  ;;  %v248_v5 = vld [vmem:[#allocation4] sm:$0xff]  ;;  %v704_v8 = vmov 0.0|0.0  }
  0x37   :  { %486 = vmatprep.mubr.msk.f32.mxu1 %vm703_vm0, %v702_v0  ;;  %90 = vmatprep.subr.mxu0 %v67_v1  ;;  %v249_v6 = vld [vmem:[#allocation4 + $0x8] sm:$0xff]  ;;  %v250_v9 = vld [vmem:[#allocation4 + $0x10] sm:$0xff]  ;;  %v251_v10 = vld [vmem:[#allocation4 + $0x18] sm:$0xff]  ;;  %v72_v52 = vshrl.u32 %v71_v51, 7 }
  0x38   :  { %91 = vmatpush1.msra.mxu0 %v66_v2  ;;  %485 = vmatpush3.msra.mxu1 %v68_v4  ;;  %v560_v7 = vpack.c.bf16 %v249_v6, %v248_v5  ;;  %v563_v11 = vpack.c.bf16 %v251_v10, %v250_v9  ;;  %v252_v12 = vld [vmem:[#allocation4 + $0x20] sm:$0xff]  ;;  %v253_v13 = vld [vmem:[#allocation4 + $0x28] sm:$0xff]  ;;  %v254_v15 = vld [vmem:[#allocation4 + $0x30] sm:$0xff] }
  0x39   :  { %442 = vmatmul.mubr.msk.f32.vlgmr.msra.gmra.mrb[0].mxu0 %vm86_vm1, %v65_v3  ;;  %487 = vmatmul.mubr.msk.f32.vlgmr.msra.gmra.mrb[0].mxu1 %vm86_vm1, %v65_v3  ;;  %v566_v14 = vpack.c.bf16 %v253_v13, %v252_v12  ;;  %v255_v16 = vld [vmem:[#allocation4 + $0x38] sm:$0xff]  ;;  %v256_v18 = vld [vmem:[#allocation4 + $0x40] sm:$0xff]  ;;  %v257_v19 = vld [vmem:[#allocation4 + $0x48] sm:$0xff]  ;;  %v73_v53 = vsub.s32 0, %v72_v52  ;;  %v81_v55 = vsub.s32 2, %v72_v52  ;;  %v77_v1 = vsub.s32 1, %v72_v52 }
  0x3a   :  { %521 = vmatprep.mubr.msk.f32.mxu0 %vm703_vm0, %v702_v0  ;;  %556 = vmatprep.mubr.msk.f32.mxu1 %vm703_vm0, %v702_v0  ;;  %v569_v17 = vpack.c.bf16 %v255_v16, %v254_v15  ;;  %v572_v20 = vpack.c.bf16 %v257_v19, %v256_v18  ;;  %v258_v21 = vld [vmem:[#allocation4 + $0x50] sm:$0xff]  ;;  %v259_v22 = vld [vmem:[#allocation4 + $0x58] sm:$0xff]  ;;  %v260_v24 = vld [vmem:[#allocation4 + $0x60] sm:$0xff] }
  0x3b   :  { %559 = vmatprep.subr.bf16.mxu0 %v704_v8  ;;  %583 = vmatprep.subr.bf16.mxu1 %v704_v8  ;;  %v575_v23 = vpack.c.bf16 %v259_v22, %v258_v21  ;;  %v261_v25 = vld [vmem:[#allocation4 + $0x68] sm:$0xff]  ;;  %v262_v27 = vld [vmem:[#allocation4 + $0x70] sm:$0xff]  ;;  %v263_v28 = vld [vmem:[#allocation4 + $0x78] sm:$0xff] }
  0x3c   :  { %561 = vmatpush3.bf16.msra.mxu0 %v560_v7  ;;  %v578_v26 = vpack.c.bf16 %v261_v25, %v260_v24  ;;  %v581_v29 = vpack.c.bf16 %v263_v28, %v262_v27  ;;  %v342_v30 = vld [vmem:[#allocation6] sm:$0xff]  ;;  %v343_v31 = vld [vmem:[#allocation6 + $0x8] sm:$0xff]  ;;  %v344_v32 = vld [vmem:[#allocation6 + $0x10] sm:$0xff] }
  0x3d   :  { %562 = vmatprep.subr.bf16.mxu0 %v704_v8  ;;  %v584_v33 = vpack.c.bf16 %v343_v31, %v342_v30  ;;  %v345_v34 = vld [vmem:[#allocation6 + $0x18] sm:$0xff]  ;;  %v346_v36 = vld [vmem:[#allocation6 + $0x20] sm:$0xff]  ;;  %v347_v37 = vld [vmem:[#allocation6 + $0x28] sm:$0xff] }
  0x3e   :  { %v587_v35 = vpack.c.bf16 %v345_v34, %v344_v32  ;;  %v590_v38 = vpack.c.bf16 %v347_v37, %v346_v36  ;;  %v348_v39 = vld [vmem:[#allocation6 + $0x30] sm:$0xff]  ;;  %v349_v40 = vld [vmem:[#allocation6 + $0x38] sm:$0xff]  ;;  %v350_v42 = vld [vmem:[#allocation6 + $0x40] sm:$0xff] }
  0x3f   :  { %585 = vmatpush3.bf16.msra.mxu1 %v584_v33  ;;  %v593_v41 = vpack.c.bf16 %v349_v40, %v348_v39  ;;  %v351_v43 = vld [vmem:[#allocation6 + $0x48] sm:$0xff]  ;;  %v352_v45 = vld [vmem:[#allocation6 + $0x50] sm:$0xff]  ;;  %v353_v46 = vld [vmem:[#allocation6 + $0x58] sm:$0xff] }
  0x40   :  { %564 = vmatpush3.bf16.msra.mxu0 %v563_v11  ;;  %586 = vmatprep.subr.bf16.mxu1 %v704_v8  ;;  %v596_v44 = vpack.c.bf16 %v351_v43, %v350_v42  ;;  %v599_v47 = vpack.c.bf16 %v353_v46, %v352_v45  ;;  %v354_v48 = vld [vmem:[#allocation6 + $0x60] sm:$0xff]  ;;  %v355_v49 = vld [vmem:[#allocation6 + $0x68] sm:$0xff]  ;;  %v356_v16 = vld [vmem:[#allocation6 + $0x70] sm:$0xff] }
  0x41   :  { %565 = vmatprep.subr.bf16.mxu0 %v704_v8  ;;  %v602_v50 = vpack.c.bf16 %v355_v49, %v354_v48  ;;  %v69_v54 = vld [vmem:[%s820_s2] sm:$0x7] }
  0x42   :  { %v74_v56 = vrot.slane %v69_v54, %v73_v53  ;;  %v82_v58 = vrot.slane %v69_v54, %v81_v55  ;;  %v78_v3 = vrot.slane %v69_v54, %v77_v1  ;;  %v446_v19 = vld [vmem:[%s822_s4] ss:$0 sm:$0xff] }
  0x43   :  { %588 = vmatpush3.bf16.msra.mxu1 %v587_v35  ;;  %v447_v24 = vld [vmem:[%s824_s6] ss:$0 sm:$0xff] }
  0x44   :  { %567 = vmatpush3.bf16.msra.mxu0 %v566_v14  ;;  %589 = vmatprep.subr.bf16.mxu1 %v704_v8 }
  0x45   :  { %568 = vmatprep.subr.bf16.mxu0 %v704_v8 }
  0x47   :  { %591 = vmatpush3.bf16.msra.mxu1 %v590_v38 }
  0x48   :  { %570 = vmatpush3.bf16.msra.mxu0 %v569_v17  ;;  %592 = vmatprep.subr.bf16.mxu1 %v704_v8  ;;  %v357_v17 = vld [vmem:[#allocation6 + $0x78] sm:$0xff] }
  0x49   :  { %571 = vmatprep.subr.bf16.mxu0 %v704_v8  ;;  %v605_v18 = vpack.c.bf16 %v357_v17, %v356_v16 }
  0x4b   :  { %594 = vmatpush3.bf16.msra.mxu1 %v593_v41 }
  0x4c   :  { %573 = vmatpush3.bf16.msra.mxu0 %v572_v20  ;;  %595 = vmatprep.subr.bf16.mxu1 %v704_v8 }
  0x4d   :  { %574 = vmatprep.subr.bf16.mxu0 %v704_v8 }
  0x4f   :  { %597 = vmatpush3.bf16.msra.mxu1 %v596_v44 }
  0x50   :  { %576 = vmatpush3.bf16.msra.mxu0 %v575_v23  ;;  %598 = vmatprep.subr.bf16.mxu1 %v704_v8 }
  0x51   :  { %577 = vmatprep.subr.bf16.mxu0 %v704_v8 }
  0x53   :  { %600 = vmatpush3.bf16.msra.mxu1 %v599_v47 }
  0x54   :  { %579 = vmatpush3.bf16.msra.mxu0 %v578_v26  ;;  %601 = vmatprep.subr.bf16.mxu1 %v704_v8 }
  0x55   :  { %580 = vmatprep.subr.bf16.mxu0 %v704_v8 }
  0x57   :  { %603 = vmatpush3.bf16.msra.mxu1 %v602_v50 }
  0x58   :  { %582 = vmatpush3.bf16.msra.mxu0 %v581_v29  ;;  %604 = vmatprep.subr.bf16.mxu1 %v704_v8 }
  0x5b   :  { %606 = vmatpush3.bf16.msra.mxu1 %v605_v18 }
 0x10c   :  { %v156_v57 = vpop.f32.mrb[0].mxu0  ;;  %v227_v59 = vpop.f32.mrb[0].mxu1 }
 0x10d   :  { %v157_v60 = vadd.f32 %v156_v57, %v74_v56  ;;  %v158_v61 = vpop.f32.mrb[1].mxu0  ;;  %v488_v62 = vpop.f32.mrb[1].mxu1  ;;  %v228_v0 = vadd.f32 %v227_v59, %v82_v58 }
 0x10e   :  { %v159_v4 = vadd.f32 %v158_v61, %v78_v3 }
 0x10f   :  { %v444_v63 = vmul.f32 -1.442695, %v157_v60  ;;  %v445_v2 = vmul.f32 -1.442695, %v228_v0 }
 0x111   :  { %615 = vpow2.f32 %v444_v63 }
 0x112   :  { %617 = vpow2.f32 %v445_v2 }
 0x113   :  { %619 = vtanh.f32 %v159_v4 }
 0x11b   :  { %v616_v5 = vpop.eup %615 }
 0x11c   :  { %v234_v6 = vadd.f32 1.0, %v616_v5  ;;  %v618_v7 = vpop.eup %617 }
 0x11d   :  { %v241_v8 = vadd.f32 1.0, %v618_v7  ;;  %v620_v9 = vpop.eup %619 }
 0x11e   :  { %621 = vrcp.f32 %v234_v6 }
 0x11f   :  { %623 = vrcp.f32 %v241_v8 }
 0x128   :  { %v622_v10 = vpop.eup %621 }
 0x129   :  { %v244_v11 = vmul.f32 %v622_v10, %v620_v9  ;;  %v624_v12 = vpop.eup %623 }
 0x12b   :  { %625 = vtanh.f32 %v244_v11 }
 0x135   :  { %v626_v13 = vpop.eup %625 }
 0x136   :  { %v246_v14 = vmul.f32 %v626_v13, %v624_v12 }
 0x138   :  { %v247_v15 = vmax.f32 %v246_v14, 0.0 }
 0x13a   :  { %522 = vmatmul.mubr.f32.vlgmr.msra.gmra.mrb[2].mxu0 %v247_v15 }
 0x20d   :  { %v337_v20 = vpop.f32.mrb[2].mxu0 }
 0x20e   :  { %v338_v21 = vadd.f32 %v446_v19, %v337_v20  ;;  %v523_v22 = vpop.f32.mrb[3].mxu0 }
 0x210   :  { %v341_v23 = vmax.f32 %v338_v21, 0.0 }
 0x212   :  { %557 = vmatmul.mubr.f32.vlgmr.msra.gmra.mrb[2].mxu1 %v341_v23 }
 0x2e5   :  { %v431_v25 = vpop.f32.mrb[2].mxu1 }
 0x2e6   :  { %v432_v26 = vadd.f32 %v447_v24, %v431_v25  ;;  %v558_v27 = vpop.f32.mrb[3].mxu1 }
 0x2e8   :  { %435 = vst [vmem:[%s825_s7] sm:$0xff] %v432_v26 }
 0x2e9   :  { %440 = vsyncpa [#allocation3], 1 }
 0x2ea   :  { %441 = vsyncpa [#allocation5], 1 }

</bundles_post_ra>
